<compile_context>
chip_gen: v5e
topology: v5e:2x2
jax: 0.10.0
libtpu: 0.0.40
codegen_flags: <defaults>
</compile_context>

<pallas_src>
import numpy as np
import jax
import jax.numpy as jnp
from jax.experimental import pallas as pl
from jax.experimental.pallas import tpu as pltpu

# ---------------------------------------------------------------------------
# Fixed FIR filter (fir_kernel=[1,3,3,1], gain=1) — separable, sum = 1.
# ---------------------------------------------------------------------------
_FIR_1D = np.array([1.0, 3.0, 3.0, 1.0], dtype=np.float32)
_K1 = _FIR_1D / _FIR_1D.sum()        # 1-D taps [0.125, 0.375, 0.375, 0.125]
_K2D = np.outer(_K1, _K1)            # 4x4 reference kernel (symmetric)


# ---------------------------------------------------------------------------
# (1a) CpxFilm linear:  (B, 512) @ (512, 5C) + bias   — single tiny MXU matmul
# ---------------------------------------------------------------------------
def _film_linear_kernel(s_ref, w_ref, b_ref, o_ref):
    s = s_ref[...].astype(jnp.float32)
    w = w_ref[...].astype(jnp.float32)
    o_ref[...] = (jnp.dot(s, w, preferred_element_type=jnp.float32)
                  + b_ref[...].astype(jnp.float32)).astype(o_ref.dtype)


# ---------------------------------------------------------------------------
# (1b) complex FiLM modulation.
#   c_ref  : (1, C, 5)   per-channel [g0, g1, g2, b0, b1]
#   x*_ref : (1, C, T*F) real / imag parts (channels on sublanes, T*F on lanes)
# ---------------------------------------------------------------------------
def _film_mod_kernel(c_ref, xr_ref, xi_ref, zr_ref, zi_ref):
    c = c_ref[...].astype(jnp.float32)
    xr = xr_ref[...].astype(jnp.float32)      # cast hoisted (once per block)
    xi = xi_ref[...].astype(jnp.float32)
    g0 = c[:, :, 0:1]
    g1 = c[:, :, 1:2]
    g2 = c[:, :, 2:3]
    b0 = c[:, :, 3:4]
    b1 = c[:, :, 4:5]
    zr_ref[...] = (g0 * xr + g1 * xi + b0).astype(zr_ref.dtype)
    zi_ref[...] = (g1 * xr + g2 * xi + b1).astype(zi_ref.dtype)


def cpx_film_modulate(x, sigma_encoding, w_lin, b_lin):
    """CpxFilm(Linear 512->5C) + Encoder's complex FiLM modulation.

    x: (B, C, T, F, 2), sigma_encoding: (B, 512), w_lin: (512, 5C), b_lin: (5C,).
    Returns z with the same shape as x.
    """
    B, C, T, F, two = x.shape
    assert two == 2
    fiveC = 5 * C

    # --- Linear(512 -> 5C); pad batch rows to a sublane multiple (tiny) -----
    Bp = ((B + 7) // 8) * 8
    sig_p = jnp.pad(sigma_encoding, ((0, Bp - B), (0, 0)))
    lin = pl.pallas_call(
        _film_linear_kernel,
        out_shape=jax.ShapeDtypeStruct((Bp, fiveC), jnp.float32),
        grid=(1,),
        in_specs=[
            pl.BlockSpec((Bp, 512), lambda i: (0, 0)),
            pl.BlockSpec((512, fiveC), lambda i: (0, 0)),
            pl.BlockSpec((1, fiveC), lambda i: (0, 0)),
        ],
        out_specs=pl.BlockSpec((Bp, fiveC), lambda i: (0, 0)),
        compiler_params=pltpu.CompilerParams(dimension_semantics=("arbitrary",)),
    )(sig_p, w_lin, b_lin.reshape(1, fiveC))
    coeffs = lin[:B].reshape(B, C, 5)          # contiguous reshape (free)

    # --- batched complex FiLM modulation ------------------------------------
    HW = T * F
    xr = x[..., 0].reshape(B, C, HW)
    xi = x[..., 1].reshape(B, C, HW)
    spec_x = pl.BlockSpec((1, C, HW), lambda i: (i, 0, 0))
    spec_c = pl.BlockSpec((1, C, 5), lambda i: (i, 0, 0))
    zr, zi = pl.pallas_call(
        _film_mod_kernel,
        out_shape=(jax.ShapeDtypeStruct((B, C, HW), x.dtype),
                   jax.ShapeDtypeStruct((B, C, HW), x.dtype)),
        grid=(B,),
        in_specs=[spec_c, spec_x, spec_x],
        out_specs=(spec_x, spec_x),
        compiler_params=pltpu.CompilerParams(dimension_semantics=("parallel",)),
    )(coeffs, xr, xi)
    return jnp.stack([zr, zi], axis=-1).reshape(B, C, T, F, 2)


# ---------------------------------------------------------------------------
# (2) FIR downsample-by-2 (E_Block contracting path).
#   x_ref    : (TB*H, W)   TB images stacked on the sublane axis (read direct from HBM)
#   bmat_ref : (W, Wo)     banded horizontal decimation matrix (taps + zero pad)
#   m*_ref   : (TB*Ho, 1)  boundary-row validity masks (first / last row of each image)
#   o_ref    : (TB*Ho, Wo)
# ---------------------------------------------------------------------------
def _fir_down_kernel(x_ref, bmat_ref, mlo_ref, mhi_ref, o_ref):
    n_out = o_ref.shape[0]                                   # TB * Ho (static)
    # vertical taps a=1 / a=2: sublane-strided loads, cast once to f32
    r1 = x_ref[pl.ds(0, n_out, stride=2), :].astype(jnp.float32)   # rows 2i
    r2 = x_ref[pl.ds(1, n_out, stride=2), :].astype(jnp.float32)   # rows 2i+1
    # taps a=0 (row above) / a=3 (row below): XLU roll + NaN-safe boundary select
    mlo = mlo_ref[...] > 0.5
    mhi = mhi_ref[...] > 0.5
    zero = jnp.zeros_like(r1)
    r0 = jnp.where(mlo, pltpu.roll(r2, 1, 0), zero)          # rows 2i-1 (0 at i=0)
    r3 = jnp.where(mhi, pltpu.roll(r1, n_out - 1, 0), zero)  # rows 2i+2 (0 at i=Ho-1)
    t = (float(_K1[0]) * r0 + float(_K1[1]) * r1
         + float(_K1[2]) * r2 + float(_K1[3]) * r3)
    # horizontal 4-tap decimating FIR == one MXU matmul with a banded matrix
    o_ref[...] = jnp.dot(t, bmat_ref[...],
                         preferred_element_type=jnp.float32).astype(o_ref.dtype)


def _fir_col_matrix(w, wo):
    """Banded (W, Wo) matrix: column j holds the taps for output column j."""
    bm = np.zeros((w, wo), dtype=np.float32)
    for j in range(wo):
        for tap in range(4):
            c = 2 * j + tap - 1
            if 0 <= c < w:
                bm[c, j] += _K1[tap]
    return bm


def _pick_block_images(nc, h, w, bytes_per_elem):
    """Images per grid step: ~2 MiB input block, multiple of 8, grid >= 2 if possible."""
    budget = 2 * 1024 * 1024
    tb = budget // max(1, h * w * bytes_per_elem)
    tb = max(8, (tb // 8) * 8)
    if tb >= nc:
        if nc >= 16 and nc % 16 == 0:
            tb = nc // 2      # keep 2 grid steps -> both v7x TensorCores busy
        else:
            tb = nc           # single full-array block
    return int(tb)


def downsample_fir(x):
    """FIR [1,3,3,1] downsample-by-2: (N, C, H, W) -> (N, C, H//2, W//2)."""
    N, C, H, W = x.shape
    assert H % 2 == 0 and W % 2 == 0, "spatial dims must be even"
    Ho, Wo = H // 2, W // 2
    NC = N * C

    x2d = x.reshape(NC * H, W)                 # contiguous view: no HBM copy

    tb = _pick_block_images(NC, H, W, x.dtype.itemsize)
    grid = (pl.cdiv(NC, tb),)

    bmat = jnp.asarray(_fir_col_matrix(W, Wo))                       # (W, Wo)
    g = jnp.arange(NC * Ho, dtype=jnp.int32) % Ho
    m_lo = (g != 0).astype(jnp.float32).reshape(NC * Ho, 1)          # row above exists
    m_hi = (g != Ho - 1).astype(jnp.float32).reshape(NC * Ho, 1)     # row below exists

    out2d = pl.pallas_call(
        _fir_down_kernel,
        out_shape=jax.ShapeDtypeStruct((NC * Ho, Wo), x.dtype),
        grid=grid,
        in_specs=[
            pl.BlockSpec((tb * H, W), lambda i: (i, 0)),
            pl.BlockSpec((W, Wo), lambda i: (0, 0)),       # constant block: fetched once
            pl.BlockSpec((tb * Ho, 1), lambda i: (i, 0)),
            pl.BlockSpec((tb * Ho, 1), lambda i: (i, 0)),
        ],
        out_specs=pl.BlockSpec((tb * Ho, Wo), lambda i: (i, 0)),
        compiler_params=pltpu.CompilerParams(
            dimension_semantics=("parallel",),
            vmem_limit_bytes=32 * 1024 * 1024,
        ),
    )(x2d, bmat, m_lo, m_hi)
    # TODO(synk): for Wo < 128 output stores are lane-masked; folding Ho into the
    # lane dim would require an in-kernel relayout (or reintroducing glue copies).
    return out2d.reshape(N, C, Ho, Wo)


# ---------------------------------------------------------------------------
# Pure-JAX references
# ---------------------------------------------------------------------------
def _film_reference(x, sigma, w_lin, b_lin):
    B, C = x.shape[0], x.shape[1]
    coeffs = (sigma @ w_lin + b_lin).reshape(B, C, 5)[:, :, :, None, None]
    xr, xi = x[..., 0], x[..., 1]
    zr = coeffs[:, :, 0] * xr + coeffs[:, :, 1] * xi + coeffs[:, :, 3]
    zi = coeffs[:, :, 1] * xr + coeffs[:, :, 2] * xi + coeffs[:, :, 4]
    return jnp.stack([zr, zi], axis=-1)


def _downsample_reference(x):
    N, C, H, W = x.shape
    xp = jnp.pad(x, ((0, 0), (0, 0), (1, 1), (1, 1)))
    w = jnp.tile(jnp.asarray(_K2D, dtype=x.dtype)[None, None], (C, 1, 1, 1))
    return jax.lax.conv_general_dilated(
        xp, w, window_strides=(2, 2), padding="VALID",
        dimension_numbers=("NCHW", "OIHW", "NCHW"), feature_group_count=C)


if __name__ == "__main__":
    key = jax.random.PRNGKey(0)
    kx, ks, kw, kb = jax.random.split(key, 4)

    # Encoder level-0 sizes: batch=2, N0=4 channels, T=F=16, complex last dim.
    B, C, T, F = 2, 4, 16, 16
    x = jax.random.normal(kx, (B, C, T, F, 2), dtype=jnp.float32)
    sigma = jax.random.normal(ks, (B, 512), dtype=jnp.float32)
    w_lin = jax.random.normal(kw, (512, 5 * C), dtype=jnp.float32) * 0.02
    b_lin = jax.random.normal(kb, (5 * C,), dtype=jnp.float32) * 0.02

    # (1) CpxFilm + complex FiLM modulation
    z = cpx_film_modulate(x, sigma, w_lin, b_lin)
    jax.block_until_ready(z)
    assert z.shape == x.shape, z.shape
    z_ref = _film_reference(x, sigma, w_lin, b_lin)
    # tolerance accounts for MXU default-precision f32 matmul vs XLA
    if not bool(jnp.allclose(z, z_ref, atol=1e-2, rtol=1e-2)):
        raise AssertionError("FiLM Pallas kernel does not match reference")

    # (2) E_Block FIR downsample-by-2 on the modulated features
    #     (real/imag folded into channels -> (N, 2C, H, W))
    d_in = jnp.moveaxis(z, -1, 2).reshape(B, 2 * C, T, F)
    y = downsample_fir(d_in)
    jax.block_until_ready(y)
    assert y.shape == (B, 2 * C, T // 2, F // 2), y.shape
    y_ref = _downsample_reference(d_in)
    if not bool(jnp.allclose(y, y_ref, atol=1e-2, rtol=1e-2)):
        raise AssertionError("FIR downsample Pallas kernel does not match reference")

    print("KERNEL_OK")
</pallas_src>

<mosaic_0001>
module attributes {stable_mosaic.version = 11 : i64} {
  func.func @_film_linear_kernel(%arg0: i32, %arg1: memref<8x512xf32, #tpu.memory_space<vmem>>, %arg2: memref<512x20xf32, #tpu.memory_space<vmem>>, %arg3: memref<1x20xf32, #tpu.memory_space<vmem>>, %arg4: memref<8x20xf32, #tpu.memory_space<vmem>>) attributes {dimension_semantics = [#tpu.dimension_semantics<arbitrary>], iteration_bounds = array<i64: 1>, scalar_prefetch = 0 : i64, scratch_operands = 0 : i64, tpu.core_type = #tpu.core_type<tc>, window_params = [{pipeline_mode = #tpu.pipeline_mode<synchronous>, transform_indices = @transform_0, window_bounds = array<i64: 8, 512>}, {pipeline_mode = #tpu.pipeline_mode<synchronous>, transform_indices = @transform_1, window_bounds = array<i64: 512, 20>}, {pipeline_mode = #tpu.pipeline_mode<synchronous>, transform_indices = @transform_2, window_bounds = array<i64: 1, 20>}, {pipeline_mode = #tpu.pipeline_mode<synchronous>, transform_indices = @transform_3, window_bounds = array<i64: 8, 20>}]} {
    %c0 = arith.constant 0 : index
    %c0_0 = arith.constant 0 : index
    %0 = vector.load %arg1[%c0, %c0_0] : memref<8x512xf32, #tpu.memory_space<vmem>>, vector<8x512xf32>
    %c0_1 = arith.constant 0 : index
    %c0_2 = arith.constant 0 : index
    %1 = vector.load %arg2[%c0_1, %c0_2] : memref<512x20xf32, #tpu.memory_space<vmem>>, vector<512x20xf32>
    %cst = arith.constant dense<0.000000e+00> : vector<8x20xf32>
    %2 = tpu.matmul %0, %1, %cst {dimension_numbers = #tpu.dot_dimension_numbers<[1], [0], [0], [1], [0, 0, 1, 1], [], []>} : vector<8x512xf32>, vector<512x20xf32>, vector<8x20xf32> -> vector<8x20xf32>
    %c0_3 = arith.constant 0 : index
    %c0_4 = arith.constant 0 : index
    %3 = vector.load %arg3[%c0_3, %c0_4] : memref<1x20xf32, #tpu.memory_space<vmem>>, vector<1x20xf32>
    %4 = vector.broadcast %3 : vector<1x20xf32> to vector<8x20xf32>
    %5 = arith.addf %2, %4 : vector<8x20xf32>
    %c0_5 = arith.constant 0 : index
    %c0_6 = arith.constant 0 : index
    %6 = vector.load %arg4[%c0_5, %c0_6] : memref<8x20xf32, #tpu.memory_space<vmem>>, vector<8x20xf32>
    tpu.vector_store %arg4[%c0_5, %c0_6], %5 {strides = array<i32>} : memref<8x20xf32, #tpu.memory_space<vmem>>, vector<8x20xf32>,
    return
  }
  func.func @transform_0(%arg0: i32) -> (i32, i32) {
    %c0_i32 = arith.constant 0 : i32
    %c0_i32_0 = arith.constant 0 : i32
    %c0_i32_1 = arith.constant 0 : i32
    return %c0_i32, %c0_i32_0 : i32, i32
  }
  func.func @transform_1(%arg0: i32) -> (i32, i32) {
    %c0_i32 = arith.constant 0 : i32
    %c0_i32_0 = arith.constant 0 : i32
    %c0_i32_1 = arith.constant 0 : i32
    return %c0_i32, %c0_i32_0 : i32, i32
  }
  func.func @transform_2(%arg0: i32) -> (i32, i32) {
    %c0_i32 = arith.constant 0 : i32
    %c0_i32_0 = arith.constant 0 : i32
    %c0_i32_1 = arith.constant 0 : i32
    return %c0_i32, %c0_i32_0 : i32, i32
  }
  func.func @transform_3(%arg0: i32) -> (i32, i32) {
    %c0_i32 = arith.constant 0 : i32
    %c0_i32_0 = arith.constant 0 : i32
    %c0_i32_1 = arith.constant 0 : i32
    return %c0_i32, %c0_i32_0 : i32, i32
  }
}

</mosaic_0001>

<bundles_post_ra>
// kernel: tpu_custom_call.1
= control target key start
LH: loop header
LB: loop body
LE: loop exit
PB: predicated region body
PF: predicated region fallthrough
CT: control target
= control target key end

     0   :  { %s444_s0 = inlined_call_operand.vmem [shape: f32[8,512], index: 0, kind: input, shape index: {}]   ;;  %s445_s1 = inlined_call_operand.vmem [shape: f32[512,20], index: 1, kind: input, shape index: {}]   ;;  %s446_s2 = inlined_call_operand.vmem [shape: f32[1,20], index: 2, kind: input, shape index: {}]   ;;  %s447_s3 = inlined_call_operand.hbm [shape: f32[8,20], index: 3, kind: output, shape index: {}]  }
   0x1   :  { %v66_v0 = vld [vmem:[%s445_s1 + $0x178] sm:$0xff]  ;;  %v65_v2 = vld [vmem:[%s445_s1 + $0x170] sm:$0xff]  ;;  %v64_v6 = vld [vmem:[%s445_s1 + $0x168] sm:$0xff] }
   0x2   :  { %v34_v1 = vld [vmem:[%s445_s1 + $0x78] sm:$0xff]  ;;  %127 = vmatpush.msra.mxu2 %v66_v0  ;;  %v33_v4 = vld [vmem:[%s445_s1 + $0x70] sm:$0xff]  ;;  %v32_v8 = vld [vmem:[%s445_s1 + $0x68] sm:$0xff] }
   0x3   :  { %87 = vmatpush.msra.mxu0 %v34_v1  ;;  %v82_v3 = vld [vmem:[%s445_s1 + $0x1f8] sm:$0xff]  ;;  %v81_v7 = vld [vmem:[%s445_s1 + $0x1f0] sm:$0xff]  ;;  %v80_v10 = vld [vmem:[%s445_s1 + $0x1e8] sm:$0xff] }
   0x4   :  { %v50_v5 = vld [vmem:[%s445_s1 + $0xf8] sm:$0xff]  ;;  %147 = vmatpush.msra.mxu3 %v82_v3  ;;  %128 = vmatpush.msra.mxu2 %v65_v2  ;;  %v49_v9 = vld [vmem:[%s445_s1 + $0xf0] sm:$0xff]  ;;  %v63_v11 = vld [vmem:[%s445_s1 + $0x160] sm:$0xff] }
   0x5   :  { %107 = vmatpush.msra.mxu1 %v50_v5  ;;  %88 = vmatpush.msra.mxu0 %v33_v4  ;;  %v31_v12 = vld [vmem:[%s445_s1 + $0x60] sm:$0xff]  ;;  %v48_v13 = vld [vmem:[%s445_s1 + $0xe8] sm:$0xff]  ;;  %v62_v16 = vld [vmem:[%s445_s1 + $0x158] sm:$0xff] }
   0x6   :  { %148 = vmatpush.msra.mxu3 %v81_v7  ;;  %129 = vmatpush.msra.mxu2 %v64_v6  ;;  %v79_v14 = vld [vmem:[%s445_s1 + $0x1e0] sm:$0xff]  ;;  %v30_v17 = vld [vmem:[%s445_s1 + $0x58] sm:$0xff]  ;;  %v61_v20 = vld [vmem:[%s445_s1 + $0x150] sm:$0xff] }
   0x7   :  { %108 = vmatpush.msra.mxu1 %v49_v9  ;;  %89 = vmatpush.msra.mxu0 %v32_v8  ;;  %v47_v15 = vld [vmem:[%s445_s1 + $0xe0] sm:$0xff]  ;;  %v78_v18 = vld [vmem:[%s445_s1 + $0x1d8] sm:$0xff]  ;;  %v29_v21 = vld [vmem:[%s445_s1 + $0x50] sm:$0xff] }
   0x8   :  { %149 = vmatpush.msra.mxu3 %v80_v10  ;;  %130 = vmatpush.msra.mxu2 %v63_v11  ;;  %v46_v19 = vld [vmem:[%s445_s1 + $0xd8] sm:$0xff]  ;;  %v77_v22 = vld [vmem:[%s445_s1 + $0x1d0] sm:$0xff]  ;;  %v60_v24 = vld [vmem:[%s445_s1 + $0x148] sm:$0xff] }
   0x9   :  { %109 = vmatpush.msra.mxu1 %v48_v13  ;;  %90 = vmatpush.msra.mxu0 %v31_v12  ;;  %v45_v23 = vld [vmem:[%s445_s1 + $0xd0] sm:$0xff]  ;;  %v28_v25 = vld [vmem:[%s445_s1 + $0x48] sm:$0xff]  ;;  %v59_v28 = vld [vmem:[%s445_s1 + $0x140] sm:$0xff] }
   0xa   :  { %150 = vmatpush.msra.mxu3 %v79_v14  ;;  %131 = vmatpush.msra.mxu2 %v62_v16  ;;  %v76_v26 = vld [vmem:[%s445_s1 + $0x1c8] sm:$0xff]  ;;  %v27_v29 = vld [vmem:[%s445_s1 + $0x40] sm:$0xff]  ;;  %v58_v32 = vld [vmem:[%s445_s1 + $0x138] sm:$0xff] }
   0xb   :  { %110 = vmatpush.msra.mxu1 %v47_v15  ;;  %91 = vmatpush.msra.mxu0 %v30_v17  ;;  %v44_v27 = vld [vmem:[%s445_s1 + $0xc8] sm:$0xff]  ;;  %v75_v30 = vld [vmem:[%s445_s1 + $0x1c0] sm:$0xff]  ;;  %v26_v33 = vld [vmem:[%s445_s1 + $0x38] sm:$0xff] }
   0xc   :  { %151 = vmatpush.msra.mxu3 %v78_v18  ;;  %132 = vmatpush.msra.mxu2 %v61_v20  ;;  %v43_v31 = vld [vmem:[%s445_s1 + $0xc0] sm:$0xff]  ;;  %v74_v34 = vld [vmem:[%s445_s1 + $0x1b8] sm:$0xff]  ;;  %v57_v36 = vld [vmem:[%s445_s1 + $0x130] sm:$0xff] }
   0xd   :  { %111 = vmatpush.msra.mxu1 %v46_v19  ;;  %92 = vmatpush.msra.mxu0 %v29_v21  ;;  %v42_v35 = vld [vmem:[%s445_s1 + $0xb8] sm:$0xff]  ;;  %v25_v37 = vld [vmem:[%s445_s1 + $0x30] sm:$0xff]  ;;  %v56_v40 = vld [vmem:[%s445_s1 + $0x128] sm:$0xff] }
   0xe   :  { %152 = vmatpush.msra.mxu3 %v77_v22  ;;  %133 = vmatpush.msra.mxu2 %v60_v24  ;;  %v73_v38 = vld [vmem:[%s445_s1 + $0x1b0] sm:$0xff]  ;;  %v24_v41 = vld [vmem:[%s445_s1 + $0x28] sm:$0xff]  ;;  %v55_v44 = vld [vmem:[%s445_s1 + $0x120] sm:$0xff] }
   0xf   :  { %112 = vmatpush.msra.mxu1 %v45_v23  ;;  %93 = vmatpush.msra.mxu0 %v28_v25  ;;  %v41_v39 = vld [vmem:[%s445_s1 + $0xb0] sm:$0xff]  ;;  %v72_v42 = vld [vmem:[%s445_s1 + $0x1a8] sm:$0xff]  ;;  %v23_v45 = vld [vmem:[%s445_s1 + $0x20] sm:$0xff] }
  0x10   :  { %153 = vmatpush.msra.mxu3 %v76_v26  ;;  %134 = vmatpush.msra.mxu2 %v59_v28  ;;  %v40_v43 = vld [vmem:[%s445_s1 + $0xa8] sm:$0xff]  ;;  %v71_v46 = vld [vmem:[%s445_s1 + $0x1a0] sm:$0xff]  ;;  %v54_v48 = vld [vmem:[%s445_s1 + $0x118] sm:$0xff] }
  0x11   :  { %113 = vmatpush.msra.mxu1 %v44_v27  ;;  %94 = vmatpush.msra.mxu0 %v27_v29  ;;  %v39_v47 = vld [vmem:[%s445_s1 + $0xa0] sm:$0xff]  ;;  %v22_v49 = vld [vmem:[%s445_s1 + $0x18] sm:$0xff] }
  0x12   :  { %154 = vmatpush.msra.mxu3 %v75_v30  ;;  %135 = vmatpush.msra.mxu2 %v58_v32  ;;  %v70_v50 = vld [vmem:[%s445_s1 + $0x198] sm:$0xff] }
  0x13   :  { %114 = vmatpush.msra.mxu1 %v43_v31  ;;  %95 = vmatpush.msra.mxu0 %v26_v33  ;;  %v38_v51 = vld [vmem:[%s445_s1 + $0x98] sm:$0xff] }
  0x14   :  { %155 = vmatpush.msra.mxu3 %v74_v34  ;;  %136 = vmatpush.msra.mxu2 %v57_v36 }
  0x15   :  { %115 = vmatpush.msra.mxu1 %v42_v35  ;;  %96 = vmatpush.msra.mxu0 %v25_v37 }
  0x16   :  { %156 = vmatpush.msra.mxu3 %v73_v38  ;;  %137 = vmatpush.msra.mxu2 %v56_v40 }
  0x17   :  { %116 = vmatpush.msra.mxu1 %v41_v39  ;;  %97 = vmatpush.msra.mxu0 %v24_v41 }
  0x18   :  { %157 = vmatpush.msra.mxu3 %v72_v42  ;;  %138 = vmatpush.msra.mxu2 %v55_v44 }
  0x19   :  { %117 = vmatpush.msra.mxu1 %v40_v43  ;;  %98 = vmatpush.msra.mxu0 %v23_v45 }
  0x1a   :  { %8 = vsyncpa [#allocation3], 0  ;;  %158 = vmatpush.msra.mxu3 %v71_v46  ;;  %v53_v52 = vld [vmem:[%s445_s1 + $0x110] sm:$0xff]  ;;  %139 = vmatpush.msra.mxu2 %v54_v48  ;;  %v52_v56 = vld [vmem:[%s445_s1 + $0x108] sm:$0xff]  ;;  %s176_s18 = sshll.u32 %s447_s3, 4  ;;  %vm167_vm0 = vcmask 162816   ;;  %s177_s18 = int_to_ptr.hbm [resolvable:$true] %s176_s18 }
  0x1b   :  { %118 = vmatpush.msra.mxu1 %v39_v47  ;;  %v21_v53 = vld [vmem:[%s445_s1 + $0x10] sm:$0xff]  ;;  %99 = vmatpush.msra.mxu0 %v22_v49  ;;  %v20_v57 = vld [vmem:[%s445_s1 + $0x8] sm:$0xff]  ;;  %v51_v60 = vld [vmem:[%s445_s1 + $0x100] sm:$0xff] }
  0x1c   :  { %v69_v54 = vld [vmem:[%s445_s1 + $0x190] sm:$0xff]  ;;  %159 = vmatpush.msra.mxu3 %v70_v50  ;;  %140 = vmatpush.msra.mxu2 %v53_v52  ;;  %v68_v58 = vld [vmem:[%s445_s1 + $0x188] sm:$0xff]  ;;  %v19_v61 = vld [vmem:[%s445_s1] sm:$0xff] }
  0x1d   :  { %v37_v55 = vld [vmem:[%s445_s1 + $0x90] sm:$0xff]  ;;  %119 = vmatpush.msra.mxu1 %v38_v51  ;;  %100 = vmatpush.msra.mxu0 %v21_v53  ;;  %v36_v59 = vld [vmem:[%s445_s1 + $0x88] sm:$0xff]  ;;  %v67_v63 = vld [vmem:[%s445_s1 + $0x180] sm:$0xff] }
  0x1e   :  { %160 = vmatpush.msra.mxu3 %v69_v54  ;;  %141 = vmatpush.msra.mxu2 %v52_v56  ;;  %v17_v62 = vld [vmem:[%s444_s0 + $0x10] sm:$0xff]  ;;  %v15_v0 = vld [vmem:[%s444_s0] sm:$0xff]  ;;  %v18_v1 = vld [vmem:[%s444_s0 + $0x18] sm:$0xff] }
  0x1f   :  { %120 = vmatpush.msra.mxu1 %v37_v55  ;;  %101 = vmatpush.msra.mxu0 %v20_v57  ;;  %v35_v2 = vld [vmem:[%s445_s1 + $0x80] sm:$0xff]  ;;  %v16_v3 = vld [vmem:[%s444_s0 + $0x8] sm:$0xff]  ;;  %s213_s1 = smov [#allocation2]  }
  0x20   :  { %161 = vmatpush.msra.mxu3 %v68_v58  ;;  %142 = vmatpush.msra.mxu2 %v51_v60  ;;  %v186_v4 = vld [vmem:[%s446_s2] ss:$0 sm:$0xff]  ;;  %s174_s15 = sshll.u32 %s213_s1, 4  ;;  %s175_s15 = int_to_ptr.vmem [resolvable:$true] %s174_s15 }
  0x21   :  { %121 = vmatpush.msra.mxu1 %v36_v59  ;;  %102 = vmatpush.msra.mxu0 %v19_v61 }
  0x22   :  { %143 = vmatmul.f32.vlgmr.msra.gmra.mxu2 %v17_v62  ;;  %162 = vmatpush.msra.mxu3 %v67_v63 }
  0x23   :  { %103 = vmatmul.f32.vlgmr.msra.gmra.mxu0 %v15_v0  ;;  %163 = vmatmul.f32.vlgmr.msra.gmra.mxu3 %v18_v1 }
  0x24   :  { %122 = vmatpush.msra.mxu1 %v35_v2 }
  0x25   :  { %123 = vmatmul.f32.vlgmr.msra.gmra.mxu1 %v16_v3 }
  0xa0   :  { %v104_v5 = vpop.f32.mrf.mxu0 }
  0xa1   :  { %v105_v6 = vadd.f32 %v186_v4, %v104_v5 }
  0xa2   :  { %v124_v7 = vpop.f32.mrf.mxu1 }
  0xa3   :  { %v125_v8 = vadd.f32 %v124_v7, %v105_v6 }
  0xa5   :  { %v144_v9 = vpop.f32.mrf.mxu2 }
  0xa6   :  { %v145_v10 = vadd.f32 %v144_v9, %v125_v8  ;;  %v164_v11 = vpop.f32.mrf.mxu3 }
  0xa8   :  { %v165_v12 = vadd.f32 %v164_v11, %v145_v10 }
  0xaa   :  { %168 = vst.msk [vmem:[#allocation2] sm:$0xff] %vm167_vm0, %v165_v12 }
  0xab   :  { %179 = dma.vmem_to_hbm [thread:$0]  %s175_s15, 128, %s177_s18, [#allocation3]  }
  0xac   :  { %211 = dma.done.wait [#allocation3], 128  }
  0xad   :  { %212 = vsyncadd [#allocation3], 4294967168 }
  0xae   :  { %184 = vsyncpa [#allocation3], 1 }

</bundles_post_ra>
